<compile_context>
chip_gen: v7x
topology: tpu7x:2x2x1
jax: 0.10.0
libtpu: 0.0.40
codegen_flags: <defaults>
</compile_context>

<pallas_src>
import functools

import numpy as np
import jax
import jax.numpy as jnp
from jax.experimental import pallas as pl
from jax.experimental.pallas import tpu as pltpu

# ----------------------------- model config ---------------------------------
INPLANES = 32
PLANES = 16
BASEWIDTH = 26
SCALE = 4
EXPANSION = 2
WIDTH = int((PLANES * BASEWIDTH) // 64)      # floor(16 * 26 / 64) = 6
WPAD = 8                                     # WIDTH padded to one sublane tile
NUMS = SCALE - 1                             # 3
OUTPLANES = PLANES * EXPANSION               # 32 (== INPLANES so residual adds)
SE_RED = 8
SE_HID = OUTPLANES // SE_RED                 # 4
SE_HID_PAD = 8
BN_EPS = 1e-5

# Tap order t = kh*3 + kw  <->  spatial offset (dh, dw) = (kh-1, kw-1)
_TAP_OFFSETS = tuple((dh, dw) for dh in (-1, 0, 1) for dw in (-1, 0, 1))


# ------------------------------ fused Pallas kernel --------------------------
def _fused_kernel(x_ref, mask_ref, w1_ref, b1_ref, w2_ref, b2_ref,
                  w3_ref, b3_ref, sw1_ref, sw2_ref, pool_ref, exp_ref,
                  o_ref, *, img_w, bhw):
    # x_ref:    (CIN, BHW)          channel-major activations (f32)
    # mask_ref: (9*WPAD, BHW)       combined zero-padding mask for the 9 taps
    # w1_ref:   (SCALE*WPAD, CIN)   conv1 1x1, BN1 folded, group-padded, bf16
    # b1_ref:   (SCALE*WPAD, 1)     f32
    # w2_ref:   (NUMS, WPAD, 9*WPAD) 3x3 convs packed along K, BN folded, bf16
    # b2_ref:   (NUMS, WPAD, 1)     f32
    # w3_ref:   (OUTPLANES, SCALE*WPAD) conv3 1x1, BN3 folded, bf16
    # b3_ref:   (OUTPLANES, 1)      f32
    # sw1_ref:  (SE_HID_PAD, OUTPLANES) f32
    # sw2_ref:  (OUTPLANES, SE_HID_PAD) f32
    # pool_ref: (BHW, BP)           per-image mean matrix
    # exp_ref:  (BP, BHW)           per-image gate-broadcast matrix
    # o_ref:    (OUTPLANES, BHW)    lane-dense output slab
    x = x_ref[...]                                   # (CIN, BHW) f32
    mask = mask_ref[...]                             # (9*WPAD, BHW) f32

    # ---- conv1 (1x1) + BN1 + ReLU  (bf16 MXU, f32 accumulate) ---------------
    out1 = jnp.dot(w1_ref[...], x.astype(jnp.bfloat16),
                   preferred_element_type=jnp.float32)
    out1 = jnp.maximum(out1 + b1_ref[...], 0.0)      # (SCALE*WPAD, BHW)

    # ---- Res2Net hierarchical 3x3 branches ----------------------------------
    def conv3x3(sp, i):
        # 9 spatial taps as static lane rotations (XLU) of the channel-major
        # slab, one combined border mask, one packed K = 9*WPAD MXU matmul.
        taps = []
        for (dh, dw) in _TAP_OFFSETS:
            shift = (-(dh * img_w + dw)) % bhw
            taps.append(sp if shift == 0 else pltpu.roll(sp, shift=shift, axis=1))
        packed = jnp.concatenate(taps, axis=0) * mask          # (9*WPAD, BHW)
        y = jnp.dot(w2_ref[i], packed.astype(jnp.bfloat16),
                    preferred_element_type=jnp.float32) + b2_ref[i]
        return jnp.maximum(y, 0.0)                   # (WPAD, BHW)

    branches = []
    sp = None
    for i in range(NUMS):
        blk = out1[i * WPAD:(i + 1) * WPAD, :]       # sublane-aligned slice
        sp = blk if i == 0 else sp + blk             # stype == 'normal'
        sp = conv3x3(sp, i)
        branches.append(sp)
    branches.append(out1[NUMS * WPAD:SCALE * WPAD, :])     # pass-through branch
    cat = jnp.concatenate(branches, axis=0)          # (SCALE*WPAD, BHW)

    # ---- conv3 (1x1) + BN3 (no relu) ----------------------------------------
    out3 = jnp.dot(w3_ref[...], cat.astype(jnp.bfloat16),
                   preferred_element_type=jnp.float32) + b3_ref[...]  # (OUT, BHW)

    # ---- SE: per-image avg pool -> fc -> ReLU -> fc -> sigmoid -> expand -----
    pooled = jnp.dot(out3, pool_ref[...], preferred_element_type=jnp.float32)  # (OUT, BP)
    hid = jnp.maximum(
        jnp.dot(sw1_ref[...], pooled, preferred_element_type=jnp.float32), 0.0)
    gate = jax.nn.sigmoid(
        jnp.dot(sw2_ref[...], hid, preferred_element_type=jnp.float32))        # (OUT, BP)
    gate_full = jnp.dot(gate, exp_ref[...], preferred_element_type=jnp.float32)  # (OUT, BHW)

    # ---- SE scale + residual (INPLANES == OUTPLANES) + final ReLU ------------
    o_ref[...] = jnp.maximum(out3 * gate_full + x, 0.0).astype(o_ref.dtype)


# ------------------------------ host-side helpers -----------------------------
def _build_tap_mask(b, h, w):
    """(9*WPAD, B*H*W) combined zero-padding mask for the 9 conv taps."""
    hw = h * w
    m1 = np.zeros((9 * WPAD, hw), np.float32)
    for t, (dh, dw) in enumerate(_TAP_OFFSETS):
        for q in range(hw):
            hh, ww = divmod(q, w)
            if 0 <= hh + dh < h and 0 <= ww + dw < w:
                m1[t * WPAD:(t + 1) * WPAD, q] = 1.0
    return jnp.asarray(np.tile(m1, (1, b)))


def _build_seg_mats(b, hw):
    """pool_mat (B*HW, BP): per-image mean; exp_mat (BP, B*HW): gate broadcast."""
    bp = ((b + 7) // 8) * 8
    pool = np.zeros((b * hw, bp), np.float32)
    exp = np.zeros((bp, b * hw), np.float32)
    for i in range(b):
        pool[i * hw:(i + 1) * hw, i] = 1.0 / hw
        exp[i, i * hw:(i + 1) * hw] = 1.0
    return jnp.asarray(pool), jnp.asarray(exp)


# ------------------------------ wrapper ---------------------------------------
def se_bottle2neck_forward(x_nchw, p):
    b, cin, h, w = x_nchw.shape
    hw = h * w
    bhw = b * hw
    # Channel-major activations: lanes hold B*HW pixels (128 for 2x8x8);
    # NCHW <-> channel-major is wrapper-side layout plumbing only.
    x_cm = jnp.transpose(x_nchw, (1, 0, 2, 3)).reshape(cin, bhw)
    mask = _build_tap_mask(b, h, w)
    pool_mat, exp_mat = _build_seg_mats(b, hw)

    kernel = functools.partial(_fused_kernel, img_w=w, bhw=bhw)
    vspec = pl.BlockSpec(memory_space=pltpu.MemorySpace.VMEM)

    out = pl.pallas_call(
        kernel,
        out_shape=jax.ShapeDtypeStruct((OUTPLANES, bhw), jnp.float32),
        in_specs=[vspec] * 12,
        out_specs=vspec,
    )(x_cm, mask, p['w1f'], p['b1f'], p['w2f'], p['b2f'],
      p['w3f'], p['b3f'], p['se_w1k'], p['se_w2k'], pool_mat, exp_mat)

    return out.reshape(OUTPLANES, b, h, w).transpose(1, 0, 2, 3)


# --------------------------- deterministic params -----------------------------
def _bn_raw(key, c):
    k1, k2, k3, k4 = jax.random.split(key, 4)
    gamma = 1.0 + 0.1 * jax.random.normal(k1, (c,), jnp.float32)
    beta = 0.1 * jax.random.normal(k2, (c,), jnp.float32)
    mean = 0.1 * jax.random.normal(k3, (c,), jnp.float32)
    var = jax.random.uniform(k4, (c,), jnp.float32, minval=0.5, maxval=1.5)
    return gamma, beta, mean, var


def _fold_bn(gamma, beta, mean, var):
    scale = gamma / jnp.sqrt(var + BN_EPS)
    bias = beta - mean * scale
    return scale, bias                                # 1-D (c,)


def _pad_group_rows(a, n_real, n_pad, ngroups):
    out = jnp.zeros((ngroups * n_pad,) + a.shape[1:], a.dtype)
    for g in range(ngroups):
        out = out.at[g * n_pad:g * n_pad + n_real].set(a[g * n_real:(g + 1) * n_real])
    return out


def _pad_group_cols(a, n_real, n_pad, ngroups):
    out = jnp.zeros(a.shape[:-1] + (ngroups * n_pad,), a.dtype)
    for g in range(ngroups):
        out = out.at[..., g * n_pad:g * n_pad + n_real].set(
            a[..., g * n_real:(g + 1) * n_real])
    return out


def init_params(key):
    ks = jax.random.split(key, 12)
    p = {}

    # conv1: torch weight (WIDTH*SCALE, INPLANES, 1, 1)
    w1 = 0.1 * jax.random.normal(ks[0], (WIDTH * SCALE, INPLANES), jnp.float32)
    s1, c1 = _fold_bn(*_bn_raw(ks[1], WIDTH * SCALE))
    p['w1'] = w1.T                                   # (I, O) for the reference
    p['bn1_scale'], p['bn1_bias'] = s1, c1
    p['w1f'] = _pad_group_rows(w1 * s1[:, None], WIDTH, WPAD, SCALE).astype(jnp.bfloat16)
    p['b1f'] = _pad_group_rows(c1[:, None], WIDTH, WPAD, SCALE)          # (32, 1)

    # 3x3 branch convs: torch weight (WIDTH, WIDTH, 3, 3) (OIHW)
    p['w2_hwio'], p['bn2_scale'], p['bn2_bias'] = [], [], []
    w2f_list, b2f_list = [], []
    for i in range(NUMS):
        wk = 0.1 * jax.random.normal(ks[2 + 2 * i], (WIDTH, WIDTH, 3, 3), jnp.float32)
        s2, c2 = _fold_bn(*_bn_raw(ks[3 + 2 * i], WIDTH))
        p['w2_hwio'].append(jnp.transpose(wk, (2, 3, 1, 0)))             # (3,3,I,O)
        p['bn2_scale'].append(s2)
        p['bn2_bias'].append(c2)
        # pack the 3x3 taps along K, pad I and O from 6 -> 8, fold BN scale
        wkf = wk * s2[:, None, None, None]
        w2p = jnp.zeros((WPAD, 9 * WPAD), jnp.float32)
        for kh in range(3):
            for kw in range(3):
                t = kh * 3 + kw
                w2p = w2p.at[:WIDTH, t * WPAD:t * WPAD + WIDTH].set(wkf[:, :, kh, kw])
        w2f_list.append(w2p)
        b2f_list.append(_pad_group_rows(c2[:, None], WIDTH, WPAD, 1))    # (8, 1)
    p['w2f'] = jnp.stack(w2f_list).astype(jnp.bfloat16)  # (NUMS, 8, 72)
    p['b2f'] = jnp.stack(b2f_list)                        # (NUMS, 8, 1)

    # conv3: torch weight (OUTPLANES, WIDTH*SCALE, 1, 1)
    w3 = 0.1 * jax.random.normal(ks[8], (OUTPLANES, WIDTH * SCALE), jnp.float32)
    s3, c3 = _fold_bn(*_bn_raw(ks[9], OUTPLANES))
    p['w3'] = w3.T
    p['bn3_scale'], p['bn3_bias'] = s3, c3
    p['w3f'] = _pad_group_cols(w3 * s3[:, None], WIDTH, WPAD, SCALE).astype(jnp.bfloat16)
    p['b3f'] = c3[:, None]                                # (32, 1)

    # SE: Linear(C, C/8, bias=False), Linear(C/8, C, bias=False)
    fc1 = 0.2 * jax.random.normal(ks[10], (SE_HID, OUTPLANES), jnp.float32)
    fc2 = 0.2 * jax.random.normal(ks[11], (OUTPLANES, SE_HID), jnp.float32)
    p['se_w1'] = fc1.T                                    # reference form
    p['se_w2'] = fc2.T
    p['se_w1k'] = jnp.zeros((SE_HID_PAD, OUTPLANES), jnp.float32).at[:SE_HID].set(fc1)
    p['se_w2k'] = jnp.zeros((OUTPLANES, SE_HID_PAD), jnp.float32).at[:, :SE_HID].set(fc2)
    return p


# ------------------------------ pure-JAX reference ----------------------------
def reference_forward(x_nchw, p):
    hi = jax.lax.Precision.HIGHEST
    x = jnp.transpose(x_nchw, (0, 2, 3, 1))

    def bn(y, s, c):
        return y * s.reshape(1, 1, 1, -1) + c.reshape(1, 1, 1, -1)

    out = jnp.einsum('bhwi,io->bhwo', x, p['w1'], precision=hi)
    out = jax.nn.relu(bn(out, p['bn1_scale'], p['bn1_bias']))
    spx = [out[..., i * WIDTH:(i + 1) * WIDTH] for i in range(SCALE)]
    outs, sp = [], None
    for i in range(NUMS):
        sp = spx[i] if i == 0 else sp + spx[i]
        sp = jax.lax.conv_general_dilated(
            sp, p['w2_hwio'][i], (1, 1), 'SAME',
            dimension_numbers=('NHWC', 'HWIO', 'NHWC'), precision=hi)
        sp = jax.nn.relu(bn(sp, p['bn2_scale'][i], p['bn2_bias'][i]))
        outs.append(sp)
    outs.append(spx[NUMS])
    out = jnp.concatenate(outs, axis=-1)
    out = jnp.einsum('bhwi,io->bhwo', out, p['w3'], precision=hi)
    out = bn(out, p['bn3_scale'], p['bn3_bias'])
    y = out.mean(axis=(1, 2))
    y = jax.nn.relu(jnp.dot(y, p['se_w1'], precision=hi))
    y = jax.nn.sigmoid(jnp.dot(y, p['se_w2'], precision=hi))
    out = out * y[:, None, None, :]
    out = jax.nn.relu(out + x)
    return jnp.transpose(out, (0, 3, 1, 2))


# ------------------------------------ main ------------------------------------
if __name__ == "__main__":
    key = jax.random.PRNGKey(0)
    kx, kp = jax.random.split(key)
    x = jax.random.normal(kx, (2, INPLANES, 8, 8), jnp.float32)   # NCHW like PyTorch
    params = init_params(kp)

    fwd = jax.jit(se_bottle2neck_forward)
    out = jax.block_until_ready(fwd(x, params))

    ref = reference_forward(x, params)
    assert out.shape == (2, OUTPLANES, 8, 8), out.shape
    max_err = float(jnp.max(jnp.abs(out - ref)))
    # Tolerance covers the bf16 MXU operands (reference runs f32 HIGHEST).
    assert jnp.allclose(out, ref, atol=2e-2, rtol=2e-2), max_err
    print("KERNEL_OK")
</pallas_src>

<mosaic_0001>
module attributes {stable_mosaic.version = 11 : i64} {
  func.func @_fused_kernel(%arg0: memref<32x128xf32, #tpu.memory_space<vmem>>, %arg1: memref<72x128xf32, #tpu.memory_space<vmem>>, %arg2: memref<32x32xbf16, #tpu.memory_space<vmem>>, %arg3: memref<32x1xf32, #tpu.memory_space<vmem>>, %arg4: memref<3x8x72xbf16, #tpu.memory_space<vmem>>, %arg5: memref<3x8x1xf32, #tpu.memory_space<vmem>>, %arg6: memref<32x32xbf16, #tpu.memory_space<vmem>>, %arg7: memref<32x1xf32, #tpu.memory_space<vmem>>, %arg8: memref<8x32xf32, #tpu.memory_space<vmem>>, %arg9: memref<32x8xf32, #tpu.memory_space<vmem>>, %arg10: memref<128x8xf32, #tpu.memory_space<vmem>>, %arg11: memref<8x128xf32, #tpu.memory_space<vmem>>, %arg12: memref<32x128xf32, #tpu.memory_space<vmem>>) attributes {dimension_semantics = [], scalar_prefetch = 0 : i64, scratch_operands = 0 : i64, tpu.core_type = #tpu.core_type<tc>} {
    %c0 = arith.constant 0 : index
    %c0_0 = arith.constant 0 : index
    %0 = vector.load %arg0[%c0, %c0_0] : memref<32x128xf32, #tpu.memory_space<vmem>>, vector<32x128xf32>
    %c0_1 = arith.constant 0 : index
    %c0_2 = arith.constant 0 : index
    %1 = vector.load %arg1[%c0_1, %c0_2] : memref<72x128xf32, #tpu.memory_space<vmem>>, vector<72x128xf32>
    %c0_3 = arith.constant 0 : index
    %c0_4 = arith.constant 0 : index
    %2 = vector.load %arg2[%c0_3, %c0_4] : memref<32x32xbf16, #tpu.memory_space<vmem>>, vector<32x32xbf16>
    %3 = arith.truncf %0 : vector<32x128xf32> to vector<32x128xbf16>
    %cst = arith.constant dense<0.000000e+00> : vector<32x128xf32>
    %4 = tpu.matmul %2, %3, %cst {dimension_numbers = #tpu.dot_dimension_numbers<[1], [0], [0], [1], [0, 0, 1, 1], [], []>} : vector<32x32xbf16>, vector<32x128xbf16>, vector<32x128xf32> -> vector<32x128xf32>
    %c0_5 = arith.constant 0 : index
    %c0_6 = arith.constant 0 : index
    %5 = vector.load %arg3[%c0_5, %c0_6] : memref<32x1xf32, #tpu.memory_space<vmem>>, vector<32x1xf32>
    %6 = vector.broadcast %5 : vector<32x1xf32> to vector<32x128xf32>
    %7 = arith.addf %4, %6 : vector<32x128xf32>
    %cst_7 = arith.constant 0.000000e+00 : f32
    %8 = vector.broadcast %cst_7 : f32 to vector<32x128xf32>
    %9 = arith.maximumf %7, %8 : vector<32x128xf32>
    %10 = vector.extract_strided_slice %9 {offsets = [0, 0], sizes = [8, 128], strides = [1, 1]} : vector<32x128xf32> to vector<8x128xf32>
    %c9_i32 = arith.constant 9 : i32
    %11 = tpu.dynamic_rotate %10 by %c9_i32 dim 1 : vector<8x128xf32>, i32 -> vector<8x128xf32>
    %c8_i32 = arith.constant 8 : i32
    %12 = tpu.dynamic_rotate %10 by %c8_i32 dim 1 : vector<8x128xf32>, i32 -> vector<8x128xf32>
    %c7_i32 = arith.constant 7 : i32
    %13 = tpu.dynamic_rotate %10 by %c7_i32 dim 1 : vector<8x128xf32>, i32 -> vector<8x128xf32>
    %c1_i32 = arith.constant 1 : i32
    %14 = tpu.dynamic_rotate %10 by %c1_i32 dim 1 : vector<8x128xf32>, i32 -> vector<8x128xf32>
    %c127_i32 = arith.constant 127 : i32
    %15 = tpu.dynamic_rotate %10 by %c127_i32 dim 1 : vector<8x128xf32>, i32 -> vector<8x128xf32>
    %c121_i32 = arith.constant 121 : i32
    %16 = tpu.dynamic_rotate %10 by %c121_i32 dim 1 : vector<8x128xf32>, i32 -> vector<8x128xf32>
    %c120_i32 = arith.constant 120 : i32
    %17 = tpu.dynamic_rotate %10 by %c120_i32 dim 1 : vector<8x128xf32>, i32 -> vector<8x128xf32>
    %c119_i32 = arith.constant 119 : i32
    %18 = tpu.dynamic_rotate %10 by %c119_i32 dim 1 : vector<8x128xf32>, i32 -> vector<8x128xf32>
    %19 = tpu.concatenate %11, %12, %13, %14, %10, %15, %16, %17, %18 in 0 : vector<8x128xf32>, vector<8x128xf32>, vector<8x128xf32>, vector<8x128xf32>, vector<8x128xf32>, vector<8x128xf32>, vector<8x128xf32>, vector<8x128xf32>, vector<8x128xf32> -> vector<72x128xf32>
    %20 = arith.mulf %19, %1 : vector<72x128xf32>
    %c0_8 = arith.constant 0 : index
    %c0_9 = arith.constant 0 : index
    %c0_10 = arith.constant 0 : index
    %21 = vector.load %arg4[%c0_8, %c0_9, %c0_10] : memref<3x8x72xbf16, #tpu.memory_space<vmem>>, vector<1x8x72xbf16>
    %22 = vector.shape_cast %21 : vector<1x8x72xbf16> to vector<8x72xbf16>
    %23 = arith.truncf %20 : vector<72x128xf32> to vector<72x128xbf16>
    %cst_11 = arith.constant dense<0.000000e+00> : vector<8x128xf32>
    %24 = tpu.matmul %22, %23, %cst_11 {dimension_numbers = #tpu.dot_dimension_numbers<[1], [0], [0], [1], [0, 0, 1, 1], [], []>} : vector<8x72xbf16>, vector<72x128xbf16>, vector<8x128xf32> -> vector<8x128xf32>
    %c0_12 = arith.constant 0 : index
    %c0_13 = arith.constant 0 : index
    %c0_14 = arith.constant 0 : index
    %25 = vector.load %arg5[%c0_12, %c0_13, %c0_14] : memref<3x8x1xf32, #tpu.memory_space<vmem>>, vector<1x8x1xf32>
    %26 = vector.shape_cast %25 : vector<1x8x1xf32> to vector<8x1xf32>
    %27 = vector.broadcast %26 : vector<8x1xf32> to vector<8x128xf32>
    %28 = arith.addf %24, %27 : vector<8x128xf32>
    %cst_15 = arith.constant 0.000000e+00 : f32
    %29 = vector.broadcast %cst_15 : f32 to vector<8x128xf32>
    %30 = arith.maximumf %28, %29 : vector<8x128xf32>
    %31 = vector.extract_strided_slice %9 {offsets = [8, 0], sizes = [8, 128], strides = [1, 1]} : vector<32x128xf32> to vector<8x128xf32>
    %32 = arith.addf %30, %31 : vector<8x128xf32>
    %c9_i32_16 = arith.constant 9 : i32
    %33 = tpu.dynamic_rotate %32 by %c9_i32_16 dim 1 : vector<8x128xf32>, i32 -> vector<8x128xf32>
    %c8_i32_17 = arith.constant 8 : i32
    %34 = tpu.dynamic_rotate %32 by %c8_i32_17 dim 1 : vector<8x128xf32>, i32 -> vector<8x128xf32>
    %c7_i32_18 = arith.constant 7 : i32
    %35 = tpu.dynamic_rotate %32 by %c7_i32_18 dim 1 : vector<8x128xf32>, i32 -> vector<8x128xf32>
    %c1_i32_19 = arith.constant 1 : i32
    %36 = tpu.dynamic_rotate %32 by %c1_i32_19 dim 1 : vector<8x128xf32>, i32 -> vector<8x128xf32>
    %c127_i32_20 = arith.constant 127 : i32
    %37 = tpu.dynamic_rotate %32 by %c127_i32_20 dim 1 : vector<8x128xf32>, i32 -> vector<8x128xf32>
    %c121_i32_21 = arith.constant 121 : i32
    %38 = tpu.dynamic_rotate %32 by %c121_i32_21 dim 1 : vector<8x128xf32>, i32 -> vector<8x128xf32>
    %c120_i32_22 = arith.constant 120 : i32
    %39 = tpu.dynamic_rotate %32 by %c120_i32_22 dim 1 : vector<8x128xf32>, i32 -> vector<8x128xf32>
    %c119_i32_23 = arith.constant 119 : i32
    %40 = tpu.dynamic_rotate %32 by %c119_i32_23 dim 1 : vector<8x128xf32>, i32 -> vector<8x128xf32>
    %41 = tpu.concatenate %33, %34, %35, %36, %32, %37, %38, %39, %40 in 0 : vector<8x128xf32>, vector<8x128xf32>, vector<8x128xf32>, vector<8x128xf32>, vector<8x128xf32>, vector<8x128xf32>, vector<8x128xf32>, vector<8x128xf32>, vector<8x128xf32> -> vector<72x128xf32>
    %42 = arith.mulf %41, %1 : vector<72x128xf32>
    %c1 = arith.constant 1 : index
    %c0_24 = arith.constant 0 : index
    %c0_25 = arith.constant 0 : index
    %43 = vector.load %arg4[%c1, %c0_24, %c0_25] : memref<3x8x72xbf16, #tpu.memory_space<vmem>>, vector<1x8x72xbf16>
    %44 = vector.shape_cast %43 : vector<1x8x72xbf16> to vector<8x72xbf16>
    %45 = arith.truncf %42 : vector<72x128xf32> to vector<72x128xbf16>
    %cst_26 = arith.constant dense<0.000000e+00> : vector<8x128xf32>
    %46 = tpu.matmul %44, %45, %cst_26 {dimension_numbers = #tpu.dot_dimension_numbers<[1], [0], [0], [1], [0, 0, 1, 1], [], []>} : vector<8x72xbf16>, vector<72x128xbf16>, vector<8x128xf32> -> vector<8x128xf32>
    %c1_27 = arith.constant 1 : index
    %c0_28 = arith.constant 0 : index
    %c0_29 = arith.constant 0 : index
    %47 = vector.load %arg5[%c1_27, %c0_28, %c0_29] : memref<3x8x1xf32, #tpu.memory_space<vmem>>, vector<1x8x1xf32>
    %48 = vector.shape_cast %47 : vector<1x8x1xf32> to vector<8x1xf32>
    %49 = vector.broadcast %48 : vector<8x1xf32> to vector<8x128xf32>
    %50 = arith.addf %46, %49 : vector<8x128xf32>
    %cst_30 = arith.constant 0.000000e+00 : f32
    %51 = vector.broadcast %cst_30 : f32 to vector<8x128xf32>
    %52 = arith.maximumf %50, %51 : vector<8x128xf32>
    %53 = vector.extract_strided_slice %9 {offsets = [16, 0], sizes = [8, 128], strides = [1, 1]} : vector<32x128xf32> to vector<8x128xf32>
    %54 = arith.addf %52, %53 : vector<8x128xf32>
    %c9_i32_31 = arith.constant 9 : i32
    %55 = tpu.dynamic_rotate %54 by %c9_i32_31 dim 1 : vector<8x128xf32>, i32 -> vector<8x128xf32>
    %c8_i32_32 = arith.constant 8 : i32
    %56 = tpu.dynamic_rotate %54 by %c8_i32_32 dim 1 : vector<8x128xf32>, i32 -> vector<8x128xf32>
    %c7_i32_33 = arith.constant 7 : i32
    %57 = tpu.dynamic_rotate %54 by %c7_i32_33 dim 1 : vector<8x128xf32>, i32 -> vector<8x128xf32>
    %c1_i32_34 = arith.constant 1 : i32
    %58 = tpu.dynamic_rotate %54 by %c1_i32_34 dim 1 : vector<8x128xf32>, i32 -> vector<8x128xf32>
    %c127_i32_35 = arith.constant 127 : i32
    %59 = tpu.dynamic_rotate %54 by %c127_i32_35 dim 1 : vector<8x128xf32>, i32 -> vector<8x128xf32>
    %c121_i32_36 = arith.constant 121 : i32
    %60 = tpu.dynamic_rotate %54 by %c121_i32_36 dim 1 : vector<8x128xf32>, i32 -> vector<8x128xf32>
    %c120_i32_37 = arith.constant 120 : i32
    %61 = tpu.dynamic_rotate %54 by %c120_i32_37 dim 1 : vector<8x128xf32>, i32 -> vector<8x128xf32>
    %c119_i32_38 = arith.constant 119 : i32
    %62 = tpu.dynamic_rotate %54 by %c119_i32_38 dim 1 : vector<8x128xf32>, i32 -> vector<8x128xf32>
    %63 = tpu.concatenate %55, %56, %57, %58, %54, %59, %60, %61, %62 in 0 : vector<8x128xf32>, vector<8x128xf32>, vector<8x128xf32>, vector<8x128xf32>, vector<8x128xf32>, vector<8x128xf32>, vector<8x128xf32>, vector<8x128xf32>, vector<8x128xf32> -> vector<72x128xf32>
    %64 = arith.mulf %63, %1 : vector<72x128xf32>
    %c2 = arith.constant 2 : index
    %c0_39 = arith.constant 0 : index
    %c0_40 = arith.constant 0 : index
    %65 = vector.load %arg4[%c2, %c0_39, %c0_40] : memref<3x8x72xbf16, #tpu.memory_space<vmem>>, vector<1x8x72xbf16>
    %66 = vector.shape_cast %65 : vector<1x8x72xbf16> to vector<8x72xbf16>
    %67 = arith.truncf %64 : vector<72x128xf32> to vector<72x128xbf16>
    %cst_41 = arith.constant dense<0.000000e+00> : vector<8x128xf32>
    %68 = tpu.matmul %66, %67, %cst_41 {dimension_numbers = #tpu.dot_dimension_numbers<[1], [0], [0], [1], [0, 0, 1, 1], [], []>} : vector<8x72xbf16>, vector<72x128xbf16>, vector<8x128xf32> -> vector<8x128xf32>
    %c2_42 = arith.constant 2 : index
    %c0_43 = arith.constant 0 : index
    %c0_44 = arith.constant 0 : index
    %69 = vector.load %arg5[%c2_42, %c0_43, %c0_44] : memref<3x8x1xf32, #tpu.memory_space<vmem>>, vector<1x8x1xf32>
    %70 = vector.shape_cast %69 : vector<1x8x1xf32> to vector<8x1xf32>
    %71 = vector.broadcast %70 : vector<8x1xf32> to vector<8x128xf32>
    %72 = arith.addf %68, %71 : vector<8x128xf32>
    %cst_45 = arith.constant 0.000000e+00 : f32
    %73 = vector.broadcast %cst_45 : f32 to vector<8x128xf32>
    %74 = arith.maximumf %72, %73 : vector<8x128xf32>
    %75 = vector.extract_strided_slice %9 {offsets = [24, 0], sizes = [8, 128], strides = [1, 1]} : vector<32x128xf32> to vector<8x128xf32>
    %76 = tpu.concatenate %30, %52, %74, %75 in 0 : vector<8x128xf32>, vector<8x128xf32>, vector<8x128xf32>, vector<8x128xf32> -> vector<32x128xf32>
    %c0_46 = arith.constant 0 : index
    %c0_47 = arith.constant 0 : index
    %77 = vector.load %arg6[%c0_46, %c0_47] : memref<32x32xbf16, #tpu.memory_space<vmem>>, vector<32x32xbf16>
    %78 = arith.truncf %76 : vector<32x128xf32> to vector<32x128xbf16>
    %cst_48 = arith.constant dense<0.000000e+00> : vector<32x128xf32>
    %79 = tpu.matmul %77, %78, %cst_48 {dimension_numbers = #tpu.dot_dimension_numbers<[1], [0], [0], [1], [0, 0, 1, 1], [], []>} : vector<32x32xbf16>, vector<32x128xbf16>, vector<32x128xf32> -> vector<32x128xf32>
    %c0_49 = arith.constant 0 : index
    %c0_50 = arith.constant 0 : index
    %80 = vector.load %arg7[%c0_49, %c0_50] : memref<32x1xf32, #tpu.memory_space<vmem>>, vector<32x1xf32>
    %81 = vector.broadcast %80 : vector<32x1xf32> to vector<32x128xf32>
    %82 = arith.addf %79, %81 : vector<32x128xf32>
    %c0_51 = arith.constant 0 : index
    %c0_52 = arith.constant 0 : index
    %83 = vector.load %arg10[%c0_51, %c0_52] : memref<128x8xf32, #tpu.memory_space<vmem>>, vector<128x8xf32>
    %cst_53 = arith.constant dense<0.000000e+00> : vector<32x8xf32>
    %84 = tpu.matmul %82, %83, %cst_53 {dimension_numbers = #tpu.dot_dimension_numbers<[1], [0], [0], [1], [0, 0, 1, 1], [], []>} : vector<32x128xf32>, vector<128x8xf32>, vector<32x8xf32> -> vector<32x8xf32>
    %c0_54 = arith.constant 0 : index
    %c0_55 = arith.constant 0 : index
    %85 = vector.load %arg8[%c0_54, %c0_55] : memref<8x32xf32, #tpu.memory_space<vmem>>, vector<8x32xf32>
    %cst_56 = arith.constant dense<0.000000e+00> : vector<8x8xf32>
    %86 = tpu.matmul %85, %84, %cst_56 {dimension_numbers = #tpu.dot_dimension_numbers<[1], [0], [0], [1], [0, 0, 1, 1], [], []>} : vector<8x32xf32>, vector<32x8xf32>, vector<8x8xf32> -> vector<8x8xf32>
    %cst_57 = arith.constant 0.000000e+00 : f32
    %87 = vector.broadcast %cst_57 : f32 to vector<8x8xf32>
    %88 = arith.maximumf %86, %87 : vector<8x8xf32>
    %c0_58 = arith.constant 0 : index
    %c0_59 = arith.constant 0 : index
    %89 = vector.load %arg9[%c0_58, %c0_59] : memref<32x8xf32, #tpu.memory_space<vmem>>, vector<32x8xf32>
    %cst_60 = arith.constant dense<0.000000e+00> : vector<32x8xf32>
    %90 = tpu.matmul %89, %88, %cst_60 {dimension_numbers = #tpu.dot_dimension_numbers<[1], [0], [0], [1], [0, 0, 1, 1], [], []>} : vector<32x8xf32>, vector<8x8xf32>, vector<32x8xf32> -> vector<32x8xf32>
    %91 = arith.negf %90 : vector<32x8xf32>
    %92 = math.exp %91 : vector<32x8xf32>
    %cst_61 = arith.constant 1.000000e+00 : f32
    %93 = vector.broadcast %cst_61 : f32 to vector<32x8xf32>
    %94 = arith.addf %93, %92 : vector<32x8xf32>
    %95 = arith.divf %93, %94 : vector<32x8xf32>
    %c0_62 = arith.constant 0 : index
    %c0_63 = arith.constant 0 : index
    %96 = vector.load %arg11[%c0_62, %c0_63] : memref<8x128xf32, #tpu.memory_space<vmem>>, vector<8x128xf32>
    %cst_64 = arith.constant dense<0.000000e+00> : vector<32x128xf32>
    %97 = tpu.matmul %95, %96, %cst_64 {dimension_numbers = #tpu.dot_dimension_numbers<[1], [0], [0], [1], [0, 0, 1, 1], [], []>} : vector<32x8xf32>, vector<8x128xf32>, vector<32x128xf32> -> vector<32x128xf32>
    %98 = arith.mulf %82, %97 : vector<32x128xf32>
    %99 = arith.addf %98, %0 : vector<32x128xf32>
    %cst_65 = arith.constant 0.000000e+00 : f32
    %100 = vector.broadcast %cst_65 : f32 to vector<32x128xf32>
    %101 = arith.maximumf %99, %100 : vector<32x128xf32>
    %c0_66 = arith.constant 0 : index
    %c0_67 = arith.constant 0 : index
    %102 = vector.load %arg12[%c0_66, %c0_67] : memref<32x128xf32, #tpu.memory_space<vmem>>, vector<32x128xf32>
    tpu.vector_store %arg12[%c0_66, %c0_67], %101 {strides = array<i32>} : memref<32x128xf32, #tpu.memory_space<vmem>>, vector<32x128xf32>,
    return
  }
}

</mosaic_0001>

<bundles_post_ra>
// kernel: se_bottle2neck_forward.1
= control target key start
LH: loop header
LB: loop body
LE: loop exit
PB: predicated region body
PF: predicated region fallthrough
CT: control target
= control target key end

     0   :  { %v1214_v3 = vmov 0   ;;  %vm95_vm0 = vcmask 261120   ;;  %v1215_v10 = vmov 0.0   ;;  %s1216_s16 = smov 8   ;;  %s1218_s17 = smov 7   ;;  %vm1222_vm1 = vmmov 0   ;;  %s1617_s0 = inlined_call_operand.vmem [shape: f32[32,128], index: 0, kind: input, shape index: {}]   ;;  %s1618_s2 = inlined_call_operand.vmem [shape: bf16[32,32], index: 2, kind: input, shape index: {}]   ;;  %s1619_s3 = inlined_call_operand.vmem [shape: f32[32,1], index: 3, kind: input, shape index: {}]   ;;  %s1620_s5 = inlined_call_operand.vmem [shape: f32[3,8,1], index: 5, kind: input, shape index: {}]   ;;  %s1621_s1 = inlined_call_operand.vmem [shape: f32[72,128], index: 1, kind: input, shape index: {}]   ;;  %s1622_s4 = inlined_call_operand.vmem [shape: bf16[3,8,72], index: 4, kind: input, shape index: {}]   ;;  %s1623_s7 = inlined_call_operand.vmem [shape: f32[32,1], index: 7, kind: input, shape index: {}]   ;;  %s1624_s6 = inlined_call_operand.vmem [shape: bf16[32,32], index: 6, kind: input, shape index: {}]   ;;  %s1625_s10 = inlined_call_operand.vmem [shape: f32[128,8], index: 10, kind: input, shape index: {}]   ;;  %s1626_s8 = inlined_call_operand.vmem [shape: f32[8,32], index: 8, kind: input, shape index: {}]   ;;  %s1627_s9 = inlined_call_operand.vmem [shape: f32[32,8], index: 9, kind: input, shape index: {}]   ;;  %s1628_s11 = inlined_call_operand.vmem [shape: f32[8,128], index: 11, kind: input, shape index: {}]   ;;  %s1629_s12 = inlined_call_operand.vmem [shape: f32[32,128], index: 12, kind: output, shape index: {}]  }
   0x1   :  { %v1294_v0 = vld [vmem:[%s1617_s0] sm:$0xff]  ;;  %v1299_v1 = vld [vmem:[%s1617_s0 + $0x8] sm:$0xff]  ;;  %v1304_v2 = vld [vmem:[%s1617_s0 + $0x10] sm:$0xff]  ;;  %1192 = vset.pattern.permute.xlu0 %v1214_v3  ;;  %1193 = vset.pattern.permute.xlu1 %v1214_v3  ;;  %s1219_s18 = smov 1   ;;  %s1220_s19 = smov 127   ;;  %vm196_vm2 = vcmask 1043456  }
   0x2   :  { %v59_v4 = vpack.c.bf16 %v1299_v1, %v1294_v0  ;;  %v1311_v5 = vld [vmem:[%s1617_s0 + $0x18] sm:$0xff]  ;;  %v1194_v7 = vld [vmem:[%s1618_s2] sm:$0xff]   ;;  %v1195_v9 = vld [vmem:[%s1618_s2 + $0x8] sm:$0xff]   ;;  %1027 = vmatprep.subr.bf16.mxu1 %v1215_v10  ;;  %s1217_s2 = smov 9   ;;  %s1221_s20 = smov 121   ;;  %1037 = vmatprep.mubr.msk.bf16.mxu1 %vm1222_vm1, %v1215_v10  ;;  %vm192_vm3 = vcmask 588800  }
   0x3   :  { %v60_v6 = vpack.c.bf16 %v1311_v5, %v1304_v2  ;;  %v61_v8 = vld [vmem:[%s1619_s3] sm:$0xff]  ;;  %1023 = vmatprep.mubr.msk.bf16.mxu0 %vm95_vm0, %v1194_v7  ;;  %s1223_s21 = smov 120   ;;  %s1224_s22 = smov 119   ;;  %v62_v18 = vld [vmem:[%s1619_s3 + $0x8] sm:$0xff]  ;;  %v1367_v26 = vld [vmem:[%s1621_s1 + $0x10] sm:$0xff]  ;;  %vm690_vm4 = vcmask 64512  }
   0x4   :  { %1019 = vmatprep.subr.bf16.mxu0 %v59_v4  ;;  %67 = vperm.xlu0 %1192, %v61_v8   ;;  %v186_v19 = vld [vmem:[%s1620_s5] sm:$0xff]  ;;  %v1355_v20 = vld [vmem:[%s1621_s1 + $0x8] sm:$0xff]  ;;  %v1372_v27 = vld [vmem:[%s1621_s1 + $0x18] sm:$0xff] }
   0x5   :  { %1020 = vmatpush3.bf16.msra.mxu0 %v59_v4  ;;  %v1360_v21 = vld [vmem:[%s1621_s1] sm:$0xff]  ;;  %v1384_v34 = vld [vmem:[%s1621_s1 + $0x28] sm:$0xff]  ;;  %v1392_v40 = vld [vmem:[%s1621_s1 + $0x30] sm:$0xff] }
   0x6   :  { %1021 = vmatprep.subr.bf16.mxu0 %v60_v6  ;;  %v1379_v33 = vld [vmem:[%s1621_s1 + $0x20] sm:$0xff]  ;;  %v1397_v41 = vld [vmem:[%s1621_s1 + $0x38] sm:$0xff]  ;;  %v936_v3 = vld [vmem:[%s1620_s5 + $0x8] sm:$0xff] }
   0x7   :  { %v1403_v42 = vld [vmem:[%s1621_s1 + $0x40] sm:$0xff]  ;;  %v63_v4 = vld [vmem:[%s1619_s3 + $0x10] sm:$0xff] }
   0x8   :  { %v180_v52 = vld [vmem:[%s1622_s4] sm:$0xf] }
   0x9   :  { %1022 = vmatpush3.bf16.msra.mxu0 %v60_v6 }
   0xa   :  { %1041 = vmatprep.subr.bf16.mxu0 %v1215_v10 }
   0xc   :  { %1024 = vmatmul.mubr.msk.bf16.vlgmr.msra.gmra.mrb[0].mxu0 %vm95_vm0, %v1195_v9 }
   0xd   :  { %1051 = vmatprep.mubr.msk.bf16.mxu0 %vm1222_vm1, %v1215_v10 }
  0x83   :  { %v68_v11 = vpop.permute.xlu0 %67 }
  0xdf   :  { %v1328_v12 = vpop.f32.mrb[0].mxu0 }
  0xe0   :  { %v136_v13 = vpop.f32.mrb[1].mxu0 }
  0xe1   :  { %v137_v14 = vadd.f32 %v136_v13, %v68_v11  ;;  %v1330_v15 = vpop.f32.mrb[2].mxu0 }
  0xe2   :  { %v1332_v16 = vpop.f32.mrb[3].mxu0 }
  0xe3   :  { %v151_v17 = vmax.f32 %v137_v14, 0.0 }
  0xe5   :  { %157 = vrot.lane.b32.xlu1 %v151_v17, %s1216_s16  ;;  %155 = vrot.lane.b32.xlu0 %v151_v17, %s1217_s2  ;;  %v175_v38 = vmul.f32 %v151_v17, %v1379_v33 }
  0xe9   :  { %159 = vrot.lane.b32.xlu1 %v151_v17, %s1218_s17  ;;  %161 = vrot.lane.b32.xlu0 %v151_v17, %s1219_s18 }
  0xed   :  { %163 = vrot.lane.b32.xlu1 %v151_v17, %s1220_s19  ;;  %165 = vrot.lane.b32.xlu0 %v151_v17, %s1221_s20 }
  0xf1   :  { %167 = vrot.lane.b32.xlu1 %v151_v17, %s1223_s21  ;;  %169 = vrot.lane.b32.xlu0 %v151_v17, %s1224_s22 }
  0xf5   :  { %72 = vperm.xlu1 %1193, %v62_v18   ;;  %189 = vperm.xlu0 %1192, %v186_v19  }
 0x157   :  { %v158_v22 = vpop.permute.xlu1 %157  ;;  %v156_v23 = vpop.permute.xlu0 %155 }
 0x158   :  { %v172_v24 = vmul.f32 %v158_v22, %v1355_v20  ;;  %v171_v25 = vmul.f32 %v156_v23, %v1360_v21 }
 0x15a   :  { %v181_v28 = vpack.c.bf16 %v172_v24, %v171_v25 }
 0x15b   :  { %v160_v29 = vpop.permute.xlu1 %159  ;;  %v162_v30 = vpop.permute.xlu0 %161 }
 0x15c   :  { %v173_v31 = vmul.f32 %v160_v29, %v1367_v26  ;;  %v174_v32 = vmul.f32 %v162_v30, %v1372_v27  ;;  %1028 = vmatpush3.bf16.msra.mxu1 %v181_v28 }
 0x15d   :  { %1029 = vmatprep.subr.bf16.mxu1 %v1215_v10 }
 0x15e   :  { %v182_v35 = vpack.c.bf16 %v174_v32, %v173_v31 }
 0x15f   :  { %v164_v36 = vpop.permute.xlu1 %163  ;;  %v166_v37 = vpop.permute.xlu0 %165 }
 0x160   :  { %v176_v39 = vmul.f32 %v164_v36, %v1384_v34  ;;  %1030 = vmatpush3.bf16.msra.mxu1 %v182_v35  ;;  %v177_v46 = vmul.f32 %v166_v37, %v1392_v40 }
 0x161   :  { %1031 = vmatprep.subr.bf16.mxu1 %v1215_v10 }
 0x162   :  { %v183_v43 = vpack.c.bf16 %v176_v39, %v175_v38  ;;  %v935_v38 = vld [vmem:[%s1622_s4 + $0x4] sm:$0xf] }
 0x163   :  { %v168_v44 = vpop.permute.xlu1 %167  ;;  %v170_v45 = vpop.permute.xlu0 %169 }
 0x164   :  { %v178_v47 = vmul.f32 %v168_v44, %v1397_v41  ;;  %v179_v48 = vmul.f32 %v170_v45, %v1403_v42  ;;  %1032 = vmatpush3.bf16.msra.mxu1 %v183_v43 }
 0x165   :  { %1033 = vmatprep.subr.bf16.mxu1 %v1215_v10 }
 0x166   :  { %v184_v49 = vpack.c.bf16 %v178_v47, %v177_v46  ;;  %v185_v50 = vpack.c.bf16 %v179_v48, %v179_v48 }
 0x168   :  { %1034 = vmatpush3.bf16.msra.mxu1 %v184_v49  ;;  %v198_v51 = vsel %vm196_vm2, %v185_v50, 0 }
 0x169   :  { %1035 = vmatprep.subr.bf16.mxu1 %v1215_v10 }
 0x16c   :  { %1036 = vmatpush3.bf16.msra.mxu1 %v198_v51 }
 0x16d   :  { %1055 = vmatprep.subr.bf16.mxu1 %v1215_v10 }
 0x16f   :  { %1038 = vmatmul.mubr.msk.bf16.vlgmr.msra.gmra.mrb[0].mxu1 %vm192_vm3, %v180_v52 }
 0x170   :  { %1065 = vmatprep.mubr.msk.bf16.mxu1 %vm1222_vm1, %v1215_v10 }
 0x174   :  { %v73_v53 = vpop.permute.xlu1 %72  ;;  %v190_v55 = vpop.permute.xlu0 %189 }
 0x175   :  { %v140_v54 = vadd.f32 %v1332_v16, %v73_v53 }
 0x177   :  { %v152_v60 = vmax.f32 %v140_v54, 0.0  ;;  %v64_v54 = vld [vmem:[%s1619_s3 + $0x18] sm:$0xff] }
 0x242   :  { %v234_v56 = vpop.f32.mrb[0].mxu1 }
 0x243   :  { %v1419_v57 = vadd.f32 %v234_v56, %v190_v55  ;;  %v1039_v58 = vpop.f32.mrb[1].mxu1  ;;  %v422_v55 = vld [vmem:[%s1623_s7 + $0x8] sm:$0xff]  ;;  %v421_v56 = vld [vmem:[%s1623_s7] sm:$0xff] }
 0x244   :  { %v237_v59 = vpop.f32.mrb[2].mxu1  ;;  %v423_v58 = vld [vmem:[%s1623_s7 + $0x10] sm:$0xff] }
 0x245   :  { %v240_v61 = vmax.f32 %v1419_v57, 0.0  ;;  %v1040_v62 = vpop.f32.mrb[3].mxu1  ;;  %v424_v57 = vld [vmem:[%s1623_s7 + $0x18] sm:$0xff] }
 0x247   :  { %v241_v63 = vadd.f32 %v240_v61, %v152_v60 }
 0x249   :  { %244 = vrot.lane.b32.xlu0 %v241_v63, %s1216_s16  ;;  %242 = vrot.lane.b32.xlu1 %v241_v63, %s1217_s2  ;;  %v262_v23 = vmul.f32 %v241_v63, %v1379_v33 }
 0x24d   :  { %248 = vrot.lane.b32.xlu0 %v241_v63, %s1219_s18  ;;  %246 = vrot.lane.b32.xlu1 %v241_v63, %s1218_s17 }
 0x251   :  { %252 = vrot.lane.b32.xlu0 %v241_v63, %s1221_s20  ;;  %250 = vrot.lane.b32.xlu1 %v241_v63, %s1220_s19 }
 0x255   :  { %256 = vrot.lane.b32.xlu0 %v241_v63, %s1224_s22  ;;  %254 = vrot.lane.b32.xlu1 %v241_v63, %s1223_s21 }
 0x259   :  { %278 = vperm.xlu0 %1192, %v936_v3   ;;  %77 = vperm.xlu1 %1193, %v63_v4  }
 0x2bb   :  { %v245_v6 = vpop.permute.xlu0 %244  ;;  %v243_v7 = vpop.permute.xlu1 %242 }
 0x2bc   :  { %v259_v8 = vmul.f32 %v245_v6, %v1355_v20  ;;  %v258_v9 = vmul.f32 %v243_v7, %v1360_v21 }
 0x2be   :  { %v269_v11 = vpack.c.bf16 %v259_v8, %v258_v9 }
 0x2bf   :  { %v249_v13 = vpop.permute.xlu0 %248  ;;  %v247_v14 = vpop.permute.xlu1 %246 }
 0x2c0   :  { %v261_v16 = vmul.f32 %v249_v13, %v1372_v27  ;;  %v260_v17 = vmul.f32 %v247_v14, %v1367_v26  ;;  %1042 = vmatpush3.bf16.msra.mxu0 %v269_v11 }
 0x2c1   :  { %1043 = vmatprep.subr.bf16.mxu0 %v1215_v10 }
 0x2c2   :  { %v270_v18 = vpack.c.bf16 %v261_v16, %v260_v17 }
 0x2c3   :  { %v253_v19 = vpop.permute.xlu0 %252  ;;  %v251_v22 = vpop.permute.xlu1 %250 }
 0x2c4   :  { %v263_v24 = vmul.f32 %v251_v22, %v1384_v34  ;;  %1044 = vmatpush3.bf16.msra.mxu0 %v270_v18  ;;  %v264_v30 = vmul.f32 %v253_v19, %v1392_v40 }
 0x2c5   :  { %1045 = vmatprep.subr.bf16.mxu0 %v1215_v10 }
 0x2c6   :  { %v271_v25 = vpack.c.bf16 %v263_v24, %v262_v23 }
 0x2c7   :  { %v257_v28 = vpop.permute.xlu0 %256  ;;  %v255_v29 = vpop.permute.xlu1 %254 }
 0x2c8   :  { %v266_v31 = vmul.f32 %v257_v28, %v1403_v42  ;;  %v265_v32 = vmul.f32 %v255_v29, %v1397_v41  ;;  %1046 = vmatpush3.bf16.msra.mxu0 %v271_v25  ;;  %v510_v29 = vld [vmem:[%s1625_s10] sm:$0xff] }
 0x2c9   :  { %1047 = vmatprep.subr.bf16.mxu0 %v1215_v10 }
 0x2ca   :  { %v272_v35 = vpack.c.bf16 %v265_v32, %v264_v30  ;;  %v273_v36 = vpack.c.bf16 %v266_v31, %v266_v31 }
 0x2cc   :  { %1048 = vmatpush3.bf16.msra.mxu0 %v272_v35  ;;  %v285_v37 = vsel %vm196_vm2, %v273_v36, 0 }
 0x2cd   :  { %1049 = vmatprep.subr.bf16.mxu0 %v1215_v10 }
 0x2d0   :  { %1050 = vmatpush3.bf16.msra.mxu0 %v285_v37  ;;  %v513_v37 = vld [vmem:[%s1625_s10 + $0x18] sm:$0xff] }
 0x2d3   :  { %1052 = vmatmul.mubr.msk.bf16.vlgmr.msra.gmra.mrb[4].mxu0 %vm192_vm3, %v935_v38  ;;  %v1197_v38 = vld [vmem:[%s1624_s6 + $0x8] sm:$0xff]  }
 0x2d8   :  { %v78_v39 = vpop.permute.xlu1 %77  ;;  %v279_v44 = vpop.permute.xlu0 %278 }
 0x2d9   :  { %v145_v43 = vadd.f32 %v1328_v12, %v78_v39  ;;  %v939_v12 = vld [vmem:[%s1620_s5 + $0x10] sm:$0xff] }
 0x2db   :  { %v153_v49 = vmax.f32 %v145_v43, 0.0  ;;  %v514_v43 = vld [vmem:[%s1625_s10 + $0x20] sm:$0xff] }
 0x3a6   :  { %v321_v45 = vpop.f32.mrb[4].mxu0 }
 0x3a7   :  { %v322_v46 = vadd.f32 %v321_v45, %v279_v44  ;;  %v1053_v47 = vpop.f32.mrb[5].mxu0  ;;  %v515_v44 = vld [vmem:[%s1625_s10 + $0x28] sm:$0xff] }
 0x3a8   :  { %v324_v48 = vpop.f32.mrb[6].mxu0  ;;  %v1150_v45 = vpack.c.bf16 %v515_v44, %v514_v43  ;;  %v517_v47 = vld [vmem:[%s1625_s10 + $0x38] sm:$0xff] }
 0x3a9   :  { %v327_v50 = vmax.f32 %v322_v46, 0.0  ;;  %v1054_v51 = vpop.f32.mrb[7].mxu0  ;;  %v516_v46 = vld [vmem:[%s1625_s10 + $0x30] sm:$0xff] }
 0x3aa   :  { %v1154_v48 = vpack.c.bf16 %v517_v47, %v516_v46 }
 0x3ab   :  { %v328_v52 = vadd.f32 %v327_v50, %v153_v49  ;;  %v419_v53 = vpack.c.bf16 %v327_v50, %v240_v61  ;;  %v518_v49 = vld [vmem:[%s1625_s10 + $0x40] sm:$0xff]  ;;  %v519_v50 = vld [vmem:[%s1625_s10 + $0x48] sm:$0xff] }
 0x3ac   :  { %v1158_v51 = vpack.c.bf16 %v519_v50, %v518_v49 }
 0x3ad   :  { %1069 = vmatprep.subr.bf16.mxu0 %v419_v53  ;;  %331 = vrot.lane.b32.xlu0 %v328_v52, %s1216_s16  ;;  %v349_v13 = vmul.f32 %v328_v52, %v1379_v33 }
 0x3ae   :  { %329 = vrot.lane.b32.xlu1 %v328_v52, %s1217_s2  ;;  %1070 = vmatpush3.bf16.msra.mxu0 %v419_v53  ;;  %v521_v53 = vld [vmem:[%s1625_s10 + $0x58] sm:$0xff] }
 0x3b1   :  { %335 = vrot.lane.b32.xlu0 %v328_v52, %s1219_s18 }
 0x3b2   :  { %333 = vrot.lane.b32.xlu1 %v328_v52, %s1218_s17 }
 0x3b5   :  { %339 = vrot.lane.b32.xlu0 %v328_v52, %s1221_s20 }
 0x3b6   :  { %337 = vrot.lane.b32.xlu1 %v328_v52, %s1220_s19 }
 0x3b9   :  { %343 = vrot.lane.b32.xlu0 %v328_v52, %s1224_s22 }
 0x3ba   :  { %341 = vrot.lane.b32.xlu1 %v328_v52, %s1223_s21  ;;  %v520_v52 = vld [vmem:[%s1625_s10 + $0x50] sm:$0xff] }
 0x3bd   :  { %365 = vperm.xlu0 %1192, %v939_v12   ;;  %v1162_v12 = vpack.c.bf16 %v521_v53, %v520_v52 }
 0x3be   :  { %82 = vperm.xlu1 %1193, %v64_v54   ;;  %v522_v54 = vld [vmem:[%s1625_s10 + $0x60] sm:$0xff] }
 0x3c1   :  { %432 = vperm.xlu0 %1192, %v422_v55   ;;  %v523_v55 = vld [vmem:[%s1625_s10 + $0x68] sm:$0xff] }
 0x3c2   :  { %427 = vperm.xlu1 %1193, %v421_v56   ;;  %v1166_v56 = vpack.c.bf16 %v523_v55, %v522_v54 }
 0x3c5   :  { %442 = vperm.xlu0 %1192, %v424_v57   ;;  %v524_v57 = vld [vmem:[%s1625_s10 + $0x70] sm:$0xff] }
 0x3c6   :  { %437 = vperm.xlu1 %1193, %v423_v58   ;;  %v525_v58 = vld [vmem:[%s1625_s10 + $0x78] sm:$0xff] }
 0x41f   :  { %v332_v59 = vpop.permute.xlu0 %331 }
 0x420   :  { %v346_v60 = vmul.f32 %v332_v59, %v1355_v20  ;;  %v330_v61 = vpop.permute.xlu1 %329  ;;  %v1170_v59 = vpack.c.bf16 %v525_v58, %v524_v57 }
 0x421   :  { %v345_v62 = vmul.f32 %v330_v61, %v1360_v21 }
 0x423   :  { %v356_v63 = vpack.c.bf16 %v346_v60, %v345_v62  ;;  %v336_v3 = vpop.permute.xlu0 %335 }
 0x424   :  { %v348_v4 = vmul.f32 %v336_v3, %v1372_v27  ;;  %v334_v6 = vpop.permute.xlu1 %333 }
 0x425   :  { %v347_v7 = vmul.f32 %v334_v6, %v1367_v26  ;;  %1056 = vmatpush3.bf16.msra.mxu1 %v356_v63 }
 0x426   :  { %1057 = vmatprep.subr.bf16.mxu1 %v1215_v10 }
 0x427   :  { %v357_v8 = vpack.c.bf16 %v348_v4, %v347_v7  ;;  %v340_v9 = vpop.permute.xlu0 %339 }
 0x428   :  { %v338_v11 = vpop.permute.xlu1 %337  ;;  %v351_v26 = vmul.f32 %v340_v9, %v1392_v40  ;;  %v1196_v40 = vld [vmem:[%s1624_s6] sm:$0xff]  }
 0x429   :  { %v350_v20 = vmul.f32 %v338_v11, %v1384_v34  ;;  %1058 = vmatpush3.bf16.msra.mxu1 %v357_v8  ;;  %v938_v34 = vld [vmem:[%s1622_s4 + $0x8] sm:$0xf]  ;;  %1073 = vmatprep.mubr.msk.bf16.mxu0 %vm95_vm0, %v1196_v40 }
 0x42a   :  { %1059 = vmatprep.subr.bf16.mxu1 %v1215_v10 }
 0x42b   :  { %v358_v21 = vpack.c.bf16 %v350_v20, %v349_v13  ;;  %v344_v14 = vpop.permute.xlu0 %343  ;;  %v1225_v20 = vmov 0.0|0.0  }
 0x42c   :  { %v353_v27 = vmul.f32 %v344_v14, %v1403_v42  ;;  %v342_v16 = vpop.permute.xlu1 %341 }
 0x42d   :  { %v352_v17 = vmul.f32 %v342_v16, %v1397_v41  ;;  %1060 = vmatpush3.bf16.msra.mxu1 %v358_v21 }
 0x42e   :  { %1061 = vmatprep.subr.bf16.mxu1 %v1215_v10  ;;  %v360_v19 = vpack.c.bf16 %v353_v27, %v353_v27 }
 0x42f   :  { %v359_v18 = vpack.c.bf16 %v352_v17, %v351_v26 }
 0x430   :  { %v372_v33 = vsel %vm196_vm2, %v360_v19, 0  ;;  %v686_v19 = vld [vmem:[%s1627_s9] sm:$0xff] }
 0x431   :  { %1062 = vmatpush3.bf16.msra.mxu1 %v359_v18  ;;  %v611_v18 = vld [vmem:[%s1626_s8] sm:$0xff] }
 0x432   :  { %1063 = vmatprep.subr.bf16.mxu1 %v1215_v10 }
 0x435   :  { %1064 = vmatpush3.bf16.msra.mxu1 %v372_v33 }
 0x436   :  { %1174 = vmatprep.subr.bf16.mxu1 %v1225_v20 }
 0x438   :  { %1066 = vmatmul.mubr.msk.bf16.vlgmr.msra.gmra.mrb[4].mxu1 %vm192_vm3, %v938_v34 }
 0x439   :  { %1123 = vmatprep.mubr.msk.f32.mxu1 %vm1222_vm1, %v1215_v10  ;;  %v511_v10 = vld [vmem:[%s1625_s10 + $0x8] sm:$0xff] }
 0x43a   :  { %v1142_v36 = vpack.c.bf16 %v511_v10, %v510_v29 }
 0x43c   :  { %v366_v22 = vpop.permute.xlu0 %365 }
 0x43d   :  { %v83_v41 = vpop.permute.xlu1 %82 }
 0x43e   :  { %v148_v42 = vadd.f32 %v1330_v15, %v83_v41  ;;  %v512_v15 = vld [vmem:[%s1625_s10 + $0x10] sm:$0xff]  ;;  %v687_v41 = vld [vmem:[%s1627_s9 + $0x8] sm:$0xff] }
 0x43f   :  { %v1146_v39 = vpack.c.bf16 %v513_v37, %v512_v15 }
 0x440   :  { %v154_v30 = vmax.f32 %v148_v42, 0.0  ;;  %v433_v62 = vpop.permute.xlu0 %432  ;;  %v688_v42 = vld [vmem:[%s1627_s9 + $0x10] sm:$0xff] }
 0x441   :  { %v428_v60 = vpop.permute.xlu1 %427 }
 0x444   :  { %v443_v11 = vpop.permute.xlu0 %442 }
 0x445   :  { %v438_v7 = vpop.permute.xlu1 %437 }
 0x50b   :  { %v408_v23 = vpop.f32.mrb[4].mxu1 }
 0x50c   :  { %v409_v24 = vadd.f32 %v408_v23, %v366_v22  ;;  %v1067_v25 = vpop.f32.mrb[5].mxu1  ;;  %v689_v22 = vld [vmem:[%s1627_s9 + $0x18] sm:$0xff]  ;;  %v812_v23 = vld [vmem:[%s1628_s11] sm:$0xff] }
 0x50d   :  { %v411_v28 = vpop.f32.mrb[6].mxu1 }
 0x50e   :  { %v414_v31 = vmax.f32 %v409_v24, 0.0  ;;  %v1068_v32 = vpop.f32.mrb[7].mxu1 }
 0x510   :  { %v420_v35 = vpack.c.bf16 %v154_v30, %v414_v31 }
 0x512   :  { %1071 = vmatprep.subr.bf16.mxu0 %v420_v35 }
 0x513   :  { %1072 = vmatpush3.bf16.msra.mxu0 %v420_v35 }
 0x514   :  { %1143 = vmatprep.subr.bf16.mxu0 %v1142_v36 }
 0x516   :  { %1074 = vmatmul.mubr.msk.bf16.vlgmr.msra.gmra.mrb[8].mxu0 %vm95_vm0, %v1197_v38 }
 0x517   :  { %1145 = vmatpush3.bf16.msra.mxu0 %v1142_v36 }
 0x518   :  { %1147 = vmatprep.subr.bf16.mxu0 %v1146_v39 }
 0x51b   :  { %1149 = vmatpush3.bf16.msra.mxu0 %v1146_v39 }
 0x51c   :  { %1151 = vmatprep.subr.bf16.mxu0 %v1150_v45 }
 0x51f   :  { %1153 = vmatpush3.bf16.msra.mxu0 %v1150_v45 }
 0x520   :  { %1155 = vmatprep.subr.bf16.mxu0 %v1154_v48 }
 0x523   :  { %1157 = vmatpush3.bf16.msra.mxu0 %v1154_v48 }
 0x524   :  { %1159 = vmatprep.subr.bf16.mxu0 %v1158_v51 }
 0x527   :  { %1161 = vmatpush3.bf16.msra.mxu0 %v1158_v51 }
 0x528   :  { %1163 = vmatprep.subr.bf16.mxu0 %v1162_v12 }
 0x52b   :  { %1165 = vmatpush3.bf16.msra.mxu0 %v1162_v12 }
 0x52c   :  { %1167 = vmatprep.subr.bf16.mxu0 %v1166_v56 }
 0x52f   :  { %1169 = vmatpush3.bf16.msra.mxu0 %v1166_v56 }
 0x530   :  { %1171 = vmatprep.subr.bf16.mxu0 %v1170_v59 }
 0x533   :  { %1173 = vmatpush3.bf16.msra.mxu0 %v1170_v59 }
 0x5e9   :  { %v1075_v61 = vpop.f32.mrb[8].mxu0 }
 0x5ea   :  { %v495_v63 = vpop.f32.mrb[9].mxu0  ;;  %v1563_v9 = vadd.f32 %v1075_v61, %v438_v7 }
 0x5eb   :  { %v1558_v3 = vadd.f32 %v495_v63, %v428_v60  ;;  %v1076_v4 = vpop.f32.mrb[10].mxu0 }
 0x5ec   :  { %v498_v6 = vpop.f32.mrb[11].mxu0  ;;  %v1567_v13 = vadd.f32 %v1076_v4, %v443_v11 }
 0x5ed   :  { %v1560_v8 = vadd.f32 %v498_v6, %v433_v62  ;;  %1109 = vmatprep.mubr.f32.mxu0 %v1558_v3 }
 0x5ef   :  { %1110 = vmatmul.mubr.f32.vlgmr.msra.gmra.mrb[12].mxu0 %v1560_v8 }
 0x5f0   :  { %1112 = vmatprep.mubr.f32.mxu0 %v1563_v9 }
 0x5f3   :  { %1113 = vmatmul.mubr.f32.gmra.mrb[14].mxu0 %v1567_v13 }
 0x6c2   :  { %v1111_v21 = vpop.f32.mrb[12].mxu0 }
 0x6c3   :  { %v592_v14 = vpop.f32.mrb[13].mxu0 }
 0x6c4   :  { %v1175_v27 = vpack.c.bf16 %v1111_v21, %v592_v14 }
 0x6c6   :  { %v1114_v16 = vpop.f32.mrb[14].mxu0  ;;  %1176 = vmatpush3.bf16.msra.mxu1 %v1175_v27 }
 0x6c7   :  { %v602_v26 = vpop.f32.mrb[15].mxu0  ;;  %1177 = vmatprep.subr.bf16.mxu1 %v1225_v20 }
 0x6c8   :  { %v1178_v17 = vpack.c.bf16 %v1114_v16, %v602_v26 }
 0x6ca   :  { %1179 = vmatpush3.bf16.msra.mxu1 %v1178_v17 }
 0x6cd   :  { %1124 = vmatmul.mubr.msk.f32.vlgmr.msra.gmra.mrb[8].mxu1 %vm95_vm0, %v611_v18 }
 0x6ce   :  { %1128 = vmatprep.mubr.msk.f32.mxu1 %vm690_vm4, %v686_v19 }
 0x7a0   :  { %v681_v33 = vpop.f32.mrb[8].mxu1 }
 0x7a1   :  { %v685_v34 = vmax.f32 %v681_v33, 0.0  ;;  %v1125_v40 = vpop.f32.mrb[9].mxu1 }
 0x7a3   :  { %1126 = vmatprep.subr.mxu1 %v685_v34 }
 0x7a4   :  { %1127 = vmatpush3.msra.mxu1 %v685_v34 }
 0x7a5   :  { %1129 = vmatmul.mubr.msk.f32.vlgmr.msra.gmra.mrb[10].mxu1 %vm690_vm4, %v687_v41  ;;  %1134 = vmatprep.subr.mxu1 %v812_v23 }
 0x7a6   :  { %1131 = vmatprep.mubr.msk.f32.mxu1 %vm690_vm4, %v688_v42  ;;  %1135 = vmatpush3.msra.mxu1 %v812_v23 }
 0x7a9   :  { %1132 = vmatmul.mubr.msk.f32.gmra.mrb[12].mxu1 %vm690_vm4, %v689_v22 }
 0x878   :  { %v1130_v24 = vpop.f32.mrb[10].mxu1 }
 0x879   :  { %v951_v25 = vmul.f32 -1.442695, %v1130_v24  ;;  %v769_v28 = vpop.f32.mrb[11].mxu1 }
 0x87a   :  { %v950_v29 = vmul.f32 -1.442695, %v769_v28 }
 0x87b   :  { %1198 = vpow2.f32 %v951_v25 }
 0x87c   :  { %1200 = vpow2.f32 %v950_v29  ;;  %v1133_v10 = vpop.f32.mrb[12].mxu1 }
 0x87d   :  { %v953_v30 = vmul.f32 -1.442695, %v1133_v10  ;;  %v779_v31 = vpop.f32.mrb[13].mxu1 }
 0x87e   :  { %v952_v32 = vmul.f32 -1.442695, %v779_v31 }
 0x87f   :  { %1202 = vpow2.f32 %v953_v30 }
 0x880   :  { %1204 = vpow2.f32 %v952_v32 }
 0x885   :  { %v1199_v35 = vpop.eup %1198 }
 0x886   :  { %v1201_v36 = vpop.eup %1200  ;;  %v801_v15 = vadd.f32 1.0, %v1199_v35 }
 0x887   :  { %v800_v37 = vadd.f32 1.0, %v1201_v36 }
 0x889   :  { %v1203_v38 = vpop.eup %1202  ;;  %1206 = vrcp.f32 %v800_v37 }
 0x88a   :  { %v1205_v39 = vpop.eup %1204  ;;  %1208 = vrcp.f32 %v801_v15  ;;  %v803_v43 = vadd.f32 1.0, %v1203_v38 }
 0x88b   :  { %v802_v44 = vadd.f32 1.0, %v1205_v39 }
 0x88d   :  { %1210 = vrcp.f32 %v802_v44 }
 0x88e   :  { %1212 = vrcp.f32 %v803_v43 }
 0x893   :  { %v1207_v45 = vpop.eup %1206 }
 0x894   :  { %v1209_v46 = vpop.eup %1208  ;;  %1136 = vmatprep.mubr.msk.f32.mxu1 %vm690_vm4, %v1207_v45 }
 0x895   :  { %1137 = vmatmul.mubr.msk.f32.vlgmr.msra.gmra.mrb[14].mxu1 %vm690_vm4, %v1209_v46 }
 0x897   :  { %v1211_v47 = vpop.eup %1210 }
 0x898   :  { %v1213_v48 = vpop.eup %1212  ;;  %1139 = vmatprep.mubr.msk.f32.mxu1 %vm690_vm4, %v1211_v47 }
 0x899   :  { %1140 = vmatmul.mubr.msk.f32.gmra.mrb[16].mxu1 %vm690_vm4, %v1213_v48 }
 0x968   :  { %v1138_v49 = vpop.f32.mrb[14].mxu1 }
 0x969   :  { %v911_v50 = vmul.f32 %v1138_v49, %v1560_v8  ;;  %v891_v51 = vpop.f32.mrb[15].mxu1 }
 0x96a   :  { %v910_v52 = vmul.f32 %v891_v51, %v1558_v3 }
 0x96b   :  { %v915_v53 = vadd.f32 %v911_v50, %v1299_v1 }
 0x96c   :  { %v914_v12 = vadd.f32 %v910_v52, %v1294_v0  ;;  %v1141_v54 = vpop.f32.mrb[16].mxu1 }
 0x96d   :  { %v919_v55 = vmax.f32 %v915_v53, 0.0  ;;  %v913_v56 = vmul.f32 %v1141_v54, %v1567_v13  ;;  %v901_v57 = vpop.f32.mrb[17].mxu1 }
 0x96e   :  { %v918_v58 = vmax.f32 %v914_v12, 0.0  ;;  %v912_v59 = vmul.f32 %v901_v57, %v1563_v9 }
 0x96f   :  { %923 = vst [vmem:[%s1629_s12 + $0x8] sm:$0xff] %v919_v55  ;;  %v917_v60 = vadd.f32 %v913_v56, %v1311_v5 }
 0x970   :  { %922 = vst [vmem:[%s1629_s12] sm:$0xff] %v918_v58  ;;  %v916_v0 = vadd.f32 %v912_v59, %v1304_v2 }
 0x971   :  { %v921_v1 = vmax.f32 %v917_v60, 0.0 }
 0x972   :  { %v920_v61 = vmax.f32 %v916_v0, 0.0 }
 0x973   :  { %925 = vst [vmem:[%s1629_s12 + $0x18] sm:$0xff] %v921_v1 }
 0x974   :  { %924 = vst [vmem:[%s1629_s12 + $0x10] sm:$0xff] %v920_v61 }

</bundles_post_ra>
